<compile_context>
chip_gen: v5e
topology: v5e:2x2
jax: 0.10.0
libtpu: 0.0.40
codegen_flags: <defaults>
</compile_context>

<pallas_src>
import math
import functools

import jax
import jax.numpy as jnp
from jax import lax
from jax.experimental import pallas as pl
from jax.experimental.pallas import tpu as pltpu


# ----------------------------- Pallas kernel --------------------------------

def _layernorm(x, g, b, eps=1e-5):
    mu = jnp.mean(x, axis=-1, keepdims=True)
    var = jnp.mean((x - mu) ** 2, axis=-1, keepdims=True)
    return (x - mu) * lax.rsqrt(var + eps) * g + b


def encoder_stack_kernel(num_heads,
                         x_ref, negmask_ref,
                         wqkv_ref, wo_ref, w1_ref, w2_ref,
                         vec_ref, fb1_ref,
                         out_ref):
    """One (batch element, layer) grid step of the fused encoder stack.

    Grid = (B, L).  The (1, S, D) output block keeps the same block index
    across the inner layer axis, so it stays resident in VMEM and carries the
    running activation from layer l-1 to layer l.

    vec_ref rows (packed small per-layer vectors, [9, D]):
      0: bq (pre-scaled by 1/sqrt(dh))   1: bk   2: bv   3: bo   4: fb2
      5: ln1_gamma  6: ln1_beta  7: ln2_gamma  8: ln2_beta
    """
    l = pl.program_id(1)

    # Seed the carried activation with the embedded input at the first layer.
    @pl.when(l == 0)
    def _():
        out_ref[...] = x_ref[...]

    x = out_ref[0]                     # [S, D] f32 running activation
    neg = negmask_ref[0]               # [1, S] f32 additive mask (0 / -1e9)
    S, D = x.shape
    H = num_heads
    dh = D // H

    vec = vec_ref[...]                 # [9, D] f32 packed per-layer vectors
    x_bf = x.astype(jnp.bfloat16)

    # ---- fused QKV projection: one MXU pass with N = 3*D.
    # The 1/sqrt(dh) scale is already folded into the Q columns of wqkv / bq.
    qkv = jnp.dot(x_bf, wqkv_ref[...], preferred_element_type=jnp.float32)
    q = (qkv[:, :D]        + vec[0:1, :]).astype(jnp.bfloat16)   # [S, D] bf16
    k = (qkv[:, D:2 * D]   + vec[1:2, :]).astype(jnp.bfloat16)
    v = (qkv[:, 2 * D:]    + vec[2:3, :]).astype(jnp.bfloat16)

    # ---- per-head attention with static lane slices.
    # No [S,H,dh] transposes; scores contract the last dims directly (A @ B^T
    # on the MXU).  The output projection is accumulated per head, so there is
    # no lane-axis concat of ctx either.  Peak live score tensor: [S, S].
    contract_last = (((1,), (1,)), ((), ()))
    attn = jnp.zeros((S, D), jnp.float32)
    for h in range(H):                                   # small H, unrolled
        sl = slice(h * dh, (h + 1) * dh)
        s = lax.dot_general(q[:, sl], k[:, sl], contract_last,
                            preferred_element_type=jnp.float32)   # [S, S]
        s = s + neg                                      # additive pad mask
        m = jnp.max(s, axis=-1, keepdims=True)
        p = jnp.exp(s - m)
        denom = jnp.sum(p, axis=-1, keepdims=True)       # [S, 1]
        ctx = jnp.dot(p.astype(jnp.bfloat16), v[:, sl],
                      preferred_element_type=jnp.float32)          # [S, dh]
        # Normalize the small [S, dh] ctx, not the [S, S] probabilities.
        # (Use approx=False here if exact parity with PyTorch softmax matters.)
        ctx = ctx * pl.reciprocal(denom, approx=True)
        attn = attn + jnp.dot(ctx.astype(jnp.bfloat16), wo_ref[sl, :],
                              preferred_element_type=jnp.float32)  # [S, D]

    # ---- add & norm 1 (f32 statistics); bo added once here.
    y = _layernorm(x + attn + vec[3:4, :], vec[5:6, :], vec[6:7, :])

    # ---- position-wise feed forward (ReLU output produced directly in bf16).
    h1 = jnp.dot(y.astype(jnp.bfloat16), w1_ref[...],
                 preferred_element_type=jnp.float32) + fb1_ref[...]
    h1 = jnp.maximum(h1, 0.0).astype(jnp.bfloat16)
    ff = jnp.dot(h1, w2_ref[...],
                 preferred_element_type=jnp.float32) + vec[4:5, :]

    # ---- add & norm 2; becomes the carry for layer l+1 ----
    out_ref[0] = _layernorm(y + ff, vec[7:8, :], vec[8:9, :])


def _pick_vmem_limit():
    """Budget VMEM per generation: spend more on v6e (128 MiB), less on v7x."""
    try:
        cap = int(pltpu.get_tpu_info().vmem_capacity_bytes)
    except Exception:
        cap = 64 * 1024 * 1024
    return max(32 * 1024 * 1024, min(3 * cap // 4, 112 * 1024 * 1024))


def encoder_stack_pallas(x, neg_mask, stack, num_heads):
    """Run the full encoder stack.

    x:        [B, S, D] f32 embedded + positionally-encoded input
    neg_mask: [B, 1, S] f32 additive mask (0 where attend, -1e9 where pad)
    """
    B, S, D = x.shape
    L = stack["wqkv"].shape[0]
    F = stack["w1"].shape[-1]
    H = num_heads

    act_spec = pl.BlockSpec((1, S, D), lambda b, l: (b, 0, 0))
    mask_spec = pl.BlockSpec((1, 1, S), lambda b, l: (b, 0, 0))

    def layer_spec(r, c):
        # Leading None: size-1 block along L, squeezed out of the kernel ref.
        # Index depends only on the layer axis -> weights stream layer by layer
        # (double-buffered: next layer prefetched while this one computes).
        return pl.BlockSpec((None, r, c), lambda b, l: (l, 0, 0))

    in_specs = [
        act_spec,                       # x (only read at l == 0)
        mask_spec,                      # precomputed additive padding mask
        layer_spec(D, 3 * D),           # wqkv (Q columns pre-scaled)
        layer_spec(D, D),               # wo
        layer_spec(D, F),               # ffn w1
        layer_spec(F, D),               # ffn w2
        layer_spec(9, D),               # packed small vectors (one DMA)
        layer_spec(1, F),               # ffn b1 (F-wide, its own DMA)
    ]

    # Advisory cost estimate (per grid step, times B*L steps).
    step_flops = (2 * S * D * 3 * D        # fused QKV
                  + 4 * S * S * D          # scores + p@v (summed over heads)
                  + 2 * S * D * D          # per-head output projection
                  + 4 * S * D * F)         # FFN
    step_weight_bytes = (3 * D * D + D * D + 2 * D * F) * 2   # bf16 weights
    step_small_bytes = (9 * D + F) * 4                        # packed vecs + fb1
    cost = pl.CostEstimate(
        flops=int(B * L * step_flops),
        transcendentals=int(B * L * (H * S * S + H * S + 2 * S)),
        bytes_accessed=int(B * L * (step_weight_bytes + step_small_bytes)
                           + 2 * B * S * D * 4 + B * S * 4),
    )

    kernel = functools.partial(encoder_stack_kernel, num_heads)
    return pl.pallas_call(
        kernel,
        out_shape=jax.ShapeDtypeStruct((B, S, D), jnp.float32),
        grid=(B, L),
        in_specs=in_specs,
        out_specs=act_spec,
        compiler_params=pltpu.CompilerParams(
            # Batch axis parallel (megacore sharding on v7x); the layer axis is
            # a serial carry, so it must be "arbitrary" and innermost.
            # TODO(synk): on v7x add a query-block parallel axis so megacore
            #             always has work even at B == 1.
            dimension_semantics=("parallel", "arbitrary"),
            vmem_limit_bytes=_pick_vmem_limit(),
        ),
        cost_estimate=cost,
    )(x, neg_mask,
      stack["wqkv"], stack["wo"], stack["w1"], stack["w2"],
      stack["vecs"], stack["fb1"])


# ------------------------------ JAX glue -------------------------------------

def sinusoidal_positional_encoding(max_seq_len, d_model):
    pos = jnp.arange(max_seq_len, dtype=jnp.float32)[:, None]
    i = jnp.arange(d_model // 2, dtype=jnp.float32)[None, :]
    angle = pos / jnp.power(10000.0, (2.0 * i) / d_model)
    pe = jnp.zeros((max_seq_len, d_model), dtype=jnp.float32)
    pe = pe.at[:, 0::2].set(jnp.sin(angle))
    pe = pe.at[:, 1::2].set(jnp.cos(angle))
    return pe


def _stack_layer_params(layers, num_heads):
    """Stack per-layer params along [L, ...]; weights -> bf16; scale folded in;
    all D-wide per-layer vectors packed into one [L, 9, D] array."""
    d_model = layers[0]["wq"].shape[0]
    dh = d_model // num_heads
    scale = 1.0 / math.sqrt(dh)

    st = lambda name: jnp.stack([lyr[name] for lyr in layers], axis=0)

    # Fold the 1/sqrt(dh) attention scale into the Q projection (weights+bias).
    wqkv = jnp.concatenate([st("wq") * scale, st("wk"), st("wv")],
                           axis=-1).astype(jnp.bfloat16)            # [L, D, 3D]
    vecs = jnp.concatenate(
        [st("bq") * scale, st("bk"), st("bv"), st("bo"), st("fb2"),
         st("ln1_g"), st("ln1_b"), st("ln2_g"), st("ln2_b")],
        axis=1).astype(jnp.float32)                                  # [L, 9, D]
    return {
        "wqkv": wqkv,
        "wo": st("wo").astype(jnp.bfloat16),
        "w1": st("w1").astype(jnp.bfloat16),
        "w2": st("w2").astype(jnp.bfloat16),
        "vecs": vecs,
        "fb1": st("fb1").astype(jnp.float32),                       # [L, 1, F]
    }


def init_encoder_params(key, src_vocab_size, d_model, num_layers, num_ff,
                        num_heads):
    keys = jax.random.split(key, 1 + num_layers)
    embedding = 0.02 * jax.random.normal(
        keys[0], (src_vocab_size, d_model), jnp.float32)
    layers = []
    for l in range(num_layers):
        k = jax.random.split(keys[1 + l], 6)
        s = 0.02
        layers.append({
            "wq": s * jax.random.normal(k[0], (d_model, d_model), jnp.float32),
            "wk": s * jax.random.normal(k[1], (d_model, d_model), jnp.float32),
            "wv": s * jax.random.normal(k[2], (d_model, d_model), jnp.float32),
            "wo": s * jax.random.normal(k[3], (d_model, d_model), jnp.float32),
            "bq": jnp.zeros((1, d_model), jnp.float32),
            "bk": jnp.zeros((1, d_model), jnp.float32),
            "bv": jnp.zeros((1, d_model), jnp.float32),
            "bo": jnp.zeros((1, d_model), jnp.float32),
            "ln1_g": jnp.ones((1, d_model), jnp.float32),
            "ln1_b": jnp.zeros((1, d_model), jnp.float32),
            "w1": s * jax.random.normal(k[4], (d_model, num_ff), jnp.float32),
            "fb1": jnp.zeros((1, num_ff), jnp.float32),
            "w2": s * jax.random.normal(k[5], (num_ff, d_model), jnp.float32),
            "fb2": jnp.zeros((1, d_model), jnp.float32),
            "ln2_g": jnp.ones((1, d_model), jnp.float32),
            "ln2_b": jnp.zeros((1, d_model), jnp.float32),
        })
    return {"embedding": embedding,
            "stack": _stack_layer_params(layers, num_heads)}


def encoder_forward(params, pe, src, src_mask, num_heads):
    """src: [B, S] int32 token ids, src_mask: [B, 1, S] float32 (1=attend)."""
    B, S = src.shape
    # word embedding gather + positional encoding (plain JAX glue)
    x = jnp.take(params["embedding"], src, axis=0) + pe[:S][None, :, :]
    # additive mask precomputed once (0 where attend, -1e9 where padded)
    neg_mask = (1.0 - src_mask) * (-1e9)
    # whole encoder stack: one fused Pallas call
    return encoder_stack_pallas(x, neg_mask, params["stack"], num_heads)


# ------------------------------- main -----------------------------------------

if __name__ == "__main__":
    src_vocab_size = 50
    d_model = 32
    num_encoder_layers = 2
    max_seq_len = 16
    num_heads = 4
    num_ff_hidden_units = 64

    B, S = 2, 8

    key = jax.random.PRNGKey(0)
    kp, ks = jax.random.split(key)
    params = init_encoder_params(kp, src_vocab_size, d_model,
                                 num_encoder_layers, num_ff_hidden_units,
                                 num_heads)
    pe = sinusoidal_positional_encoding(max_seq_len, d_model)

    src = jax.random.randint(ks, (B, S), 0, src_vocab_size, dtype=jnp.int32)
    # padding mask: sequence lengths [8, 5]
    lengths = jnp.array([8, 5], dtype=jnp.int32)
    src_mask = (jnp.arange(S)[None, :] < lengths[:, None]).astype(jnp.float32)
    src_mask = src_mask[:, None, :]   # [B, 1, S]

    fwd = jax.jit(functools.partial(encoder_forward, num_heads=num_heads))
    out = fwd(params, pe, src, src_mask)
    jax.block_until_ready(out)

    assert out.shape == (B, S, d_model), out.shape
    assert out.dtype == jnp.float32
    assert bool(jnp.all(jnp.isfinite(out)))
    print("KERNEL_OK")
</pallas_src>

<mosaic_0001>
module attributes {stable_mosaic.version = 11 : i64} {
  func.func @encoder_stack_kernel(%arg0: i32, %arg1: i32, %arg2: memref<1x8x32xf32, #tpu.memory_space<vmem>>, %arg3: memref<1x1x8xf32, #tpu.memory_space<vmem>>, %arg4: memref<1x32x96xbf16, #tpu.memory_space<vmem>>, %arg5: memref<1x32x32xbf16, #tpu.memory_space<vmem>>, %arg6: memref<1x32x64xbf16, #tpu.memory_space<vmem>>, %arg7: memref<1x64x32xbf16, #tpu.memory_space<vmem>>, %arg8: memref<1x9x32xf32, #tpu.memory_space<vmem>>, %arg9: memref<1x1x64xf32, #tpu.memory_space<vmem>>, %arg10: memref<1x8x32xf32, #tpu.memory_space<vmem>>) attributes {dimension_semantics = [#tpu.dimension_semantics<parallel>, #tpu.dimension_semantics<arbitrary>], iteration_bounds = array<i64: 2, 2>, scalar_prefetch = 0 : i64, scratch_operands = 0 : i64, tpu.core_type = #tpu.core_type<tc>, window_params = [{transform_indices = @transform_0, window_bounds = array<i64: 1, 8, 32>}, {transform_indices = @transform_1, window_bounds = array<i64: 1, 1, 8>}, {transform_indices = @transform_2, window_bounds = array<i64: 1, 32, 96>}, {transform_indices = @transform_3, window_bounds = array<i64: 1, 32, 32>}, {transform_indices = @transform_4, window_bounds = array<i64: 1, 32, 64>}, {transform_indices = @transform_5, window_bounds = array<i64: 1, 64, 32>}, {transform_indices = @transform_6, window_bounds = array<i64: 1, 9, 32>}, {transform_indices = @transform_7, window_bounds = array<i64: 1, 1, 64>}, {transform_indices = @transform_8, window_bounds = array<i64: 1, 8, 32>}]} {
    %c0_i32 = arith.constant 0 : i32
    %0 = arith.cmpi eq, %arg1, %c0_i32 : i32
    %1 = arith.extui %0 : i1 to i32
    %c0_i32_0 = arith.constant 0 : i32
    %2 = arith.cmpi ne, %1, %c0_i32_0 : i32
    scf.if %2 {
      %c0_67 = arith.constant 0 : index
      %c0_68 = arith.constant 0 : index
      %c0_69 = arith.constant 0 : index
      %194 = vector.load %arg2[%c0_67, %c0_68, %c0_69] : memref<1x8x32xf32, #tpu.memory_space<vmem>>, vector<1x8x32xf32>
      %c0_70 = arith.constant 0 : index
      %c0_71 = arith.constant 0 : index
      %c0_72 = arith.constant 0 : index
      %195 = vector.load %arg10[%c0_70, %c0_71, %c0_72] : memref<1x8x32xf32, #tpu.memory_space<vmem>>, vector<1x8x32xf32>
      tpu.vector_store %arg10[%c0_70, %c0_71, %c0_72], %194 {strides = array<i32>} : memref<1x8x32xf32, #tpu.memory_space<vmem>>, vector<1x8x32xf32>,
    } else {
    }
    %c0 = arith.constant 0 : index
    %c0_1 = arith.constant 0 : index
    %c0_2 = arith.constant 0 : index
    %3 = vector.load %arg10[%c0, %c0_1, %c0_2] : memref<1x8x32xf32, #tpu.memory_space<vmem>>, vector<1x8x32xf32>
    %4 = vector.shape_cast %3 : vector<1x8x32xf32> to vector<8x32xf32>
    %c0_3 = arith.constant 0 : index
    %c0_4 = arith.constant 0 : index
    %c0_5 = arith.constant 0 : index
    %5 = vector.load %arg3[%c0_3, %c0_4, %c0_5] : memref<1x1x8xf32, #tpu.memory_space<vmem>>, vector<1x1x8xf32>
    %6 = vector.shape_cast %5 : vector<1x1x8xf32> to vector<1x8xf32>
    %c0_6 = arith.constant 0 : index
    %c0_7 = arith.constant 0 : index
    %c0_8 = arith.constant 0 : index
    %7 = vector.load %arg8[%c0_6, %c0_7, %c0_8] : memref<1x9x32xf32, #tpu.memory_space<vmem>>, vector<1x9x32xf32>
    %8 = vector.shape_cast %7 : vector<1x9x32xf32> to vector<9x32xf32>
    %9 = arith.truncf %4 : vector<8x32xf32> to vector<8x32xbf16>
    %c0_9 = arith.constant 0 : index
    %c0_10 = arith.constant 0 : index
    %c0_11 = arith.constant 0 : index
    %10 = vector.load %arg4[%c0_9, %c0_10, %c0_11] : memref<1x32x96xbf16, #tpu.memory_space<vmem>>, vector<1x32x96xbf16>
    %11 = vector.shape_cast %10 : vector<1x32x96xbf16> to vector<32x96xbf16>
    %cst = arith.constant dense<0.000000e+00> : vector<8x96xf32>
    %12 = tpu.matmul %9, %11, %cst {dimension_numbers = #tpu.dot_dimension_numbers<[1], [0], [0], [1], [0, 0, 1, 1], [], []>} : vector<8x32xbf16>, vector<32x96xbf16>, vector<8x96xf32> -> vector<8x96xf32>
    %13 = vector.extract_strided_slice %12 {offsets = [0, 0], sizes = [8, 32], strides = [1, 1]} : vector<8x96xf32> to vector<8x32xf32>
    %14 = vector.extract_strided_slice %8 {offsets = [0, 0], sizes = [1, 32], strides = [1, 1]} : vector<9x32xf32> to vector<1x32xf32>
    %15 = vector.broadcast %14 : vector<1x32xf32> to vector<8x32xf32>
    %16 = arith.addf %13, %15 : vector<8x32xf32>
    %17 = arith.truncf %16 : vector<8x32xf32> to vector<8x32xbf16>
    %18 = vector.extract_strided_slice %12 {offsets = [0, 32], sizes = [8, 32], strides = [1, 1]} : vector<8x96xf32> to vector<8x32xf32>
    %19 = vector.extract_strided_slice %8 {offsets = [1, 0], sizes = [1, 32], strides = [1, 1]} : vector<9x32xf32> to vector<1x32xf32>
    %20 = vector.broadcast %19 : vector<1x32xf32> to vector<8x32xf32>
    %21 = arith.addf %18, %20 : vector<8x32xf32>
    %22 = arith.truncf %21 : vector<8x32xf32> to vector<8x32xbf16>
    %23 = vector.extract_strided_slice %12 {offsets = [0, 64], sizes = [8, 32], strides = [1, 1]} : vector<8x96xf32> to vector<8x32xf32>
    %24 = vector.extract_strided_slice %8 {offsets = [2, 0], sizes = [1, 32], strides = [1, 1]} : vector<9x32xf32> to vector<1x32xf32>
    %25 = vector.broadcast %24 : vector<1x32xf32> to vector<8x32xf32>
    %26 = arith.addf %23, %25 : vector<8x32xf32>
    %27 = arith.truncf %26 : vector<8x32xf32> to vector<8x32xbf16>
    %cst_12 = arith.constant 0.000000e+00 : f32
    %28 = vector.broadcast %cst_12 : f32 to vector<8x32xf32>
    %29 = vector.extract_strided_slice %17 {offsets = [0, 0], sizes = [8, 8], strides = [1, 1]} : vector<8x32xbf16> to vector<8x8xbf16>
    %30 = vector.extract_strided_slice %22 {offsets = [0, 0], sizes = [8, 8], strides = [1, 1]} : vector<8x32xbf16> to vector<8x8xbf16>
    %cst_13 = arith.constant dense<0.000000e+00> : vector<8x8xf32>
    %31 = tpu.matmul %29, %30, %cst_13 {dimension_numbers = #tpu.dot_dimension_numbers<[1], [1], [0], [0], [0, 0, 1, 0], [], []>} : vector<8x8xbf16>, vector<8x8xbf16>, vector<8x8xf32> -> vector<8x8xf32>
    %32 = vector.broadcast %6 : vector<1x8xf32> to vector<8x8xf32>
    %33 = arith.addf %31, %32 : vector<8x8xf32>
    %cst_14 = arith.constant dense<0xFF800000> : vector<8xf32>
    %34 = vector.multi_reduction <maximumf>, %33, %cst_14 [1] : vector<8x8xf32> to vector<8xf32>
    %35 = vector.shape_cast %34 : vector<8xf32> to vector<8x1xf32>
    %36 = vector.broadcast %35 : vector<8x1xf32> to vector<8x8xf32>
    %37 = arith.subf %33, %36 : vector<8x8xf32>
    %38 = math.exp %37 : vector<8x8xf32>
    %cst_15 = arith.constant dense<0.000000e+00> : vector<8xf32>
    %39 = vector.multi_reduction <add>, %38, %cst_15 [1] : vector<8x8xf32> to vector<8xf32>
    %40 = vector.shape_cast %39 : vector<8xf32> to vector<8x1xf32>
    %41 = arith.truncf %38 : vector<8x8xf32> to vector<8x8xbf16>
    %42 = vector.extract_strided_slice %27 {offsets = [0, 0], sizes = [8, 8], strides = [1, 1]} : vector<8x32xbf16> to vector<8x8xbf16>
    %cst_16 = arith.constant dense<0.000000e+00> : vector<8x8xf32>
    %43 = tpu.matmul %41, %42, %cst_16 {dimension_numbers = #tpu.dot_dimension_numbers<[1], [0], [0], [1], [0, 0, 1, 1], [], []>} : vector<8x8xbf16>, vector<8x8xbf16>, vector<8x8xf32> -> vector<8x8xf32>
    %44 = tpu.reciprocal %40 {approx = true} : vector<8x1xf32> -> vector<8x1xf32>
    %45 = vector.broadcast %44 : vector<8x1xf32> to vector<8x8xf32>
    %46 = arith.mulf %43, %45 : vector<8x8xf32>
    %47 = arith.truncf %46 : vector<8x8xf32> to vector<8x8xbf16>
    %c0_17 = arith.constant 0 : index
    %c0_18 = arith.constant 0 : index
    %c0_19 = arith.constant 0 : index
    %48 = vector.load %arg5[%c0_17, %c0_18, %c0_19] : memref<1x32x32xbf16, #tpu.memory_space<vmem>>, vector<1x8x32xbf16>
    %49 = vector.shape_cast %48 : vector<1x8x32xbf16> to vector<8x32xbf16>
    %cst_20 = arith.constant dense<0.000000e+00> : vector<8x32xf32>
    %50 = tpu.matmul %47, %49, %cst_20 {dimension_numbers = #tpu.dot_dimension_numbers<[1], [0], [0], [1], [0, 0, 1, 1], [], []>} : vector<8x8xbf16>, vector<8x32xbf16>, vector<8x32xf32> -> vector<8x32xf32>
    %51 = arith.addf %28, %50 : vector<8x32xf32>
    %52 = vector.extract_strided_slice %17 {offsets = [0, 8], sizes = [8, 8], strides = [1, 1]} : vector<8x32xbf16> to vector<8x8xbf16>
    %53 = vector.extract_strided_slice %22 {offsets = [0, 8], sizes = [8, 8], strides = [1, 1]} : vector<8x32xbf16> to vector<8x8xbf16>
    %cst_21 = arith.constant dense<0.000000e+00> : vector<8x8xf32>
    %54 = tpu.matmul %52, %53, %cst_21 {dimension_numbers = #tpu.dot_dimension_numbers<[1], [1], [0], [0], [0, 0, 1, 0], [], []>} : vector<8x8xbf16>, vector<8x8xbf16>, vector<8x8xf32> -> vector<8x8xf32>
    %55 = vector.broadcast %6 : vector<1x8xf32> to vector<8x8xf32>
    %56 = arith.addf %54, %55 : vector<8x8xf32>
    %cst_22 = arith.constant dense<0xFF800000> : vector<8xf32>
    %57 = vector.multi_reduction <maximumf>, %56, %cst_22 [1] : vector<8x8xf32> to vector<8xf32>
    %58 = vector.shape_cast %57 : vector<8xf32> to vector<8x1xf32>
    %59 = vector.broadcast %58 : vector<8x1xf32> to vector<8x8xf32>
    %60 = arith.subf %56, %59 : vector<8x8xf32>
    %61 = math.exp %60 : vector<8x8xf32>
    %cst_23 = arith.constant dense<0.000000e+00> : vector<8xf32>
    %62 = vector.multi_reduction <add>, %61, %cst_23 [1] : vector<8x8xf32> to vector<8xf32>
    %63 = vector.shape_cast %62 : vector<8xf32> to vector<8x1xf32>
    %64 = arith.truncf %61 : vector<8x8xf32> to vector<8x8xbf16>
    %65 = vector.extract_strided_slice %27 {offsets = [0, 8], sizes = [8, 8], strides = [1, 1]} : vector<8x32xbf16> to vector<8x8xbf16>
    %cst_24 = arith.constant dense<0.000000e+00> : vector<8x8xf32>
    %66 = tpu.matmul %64, %65, %cst_24 {dimension_numbers = #tpu.dot_dimension_numbers<[1], [0], [0], [1], [0, 0, 1, 1], [], []>} : vector<8x8xbf16>, vector<8x8xbf16>, vector<8x8xf32> -> vector<8x8xf32>
    %67 = tpu.reciprocal %63 {approx = true} : vector<8x1xf32> -> vector<8x1xf32>
    %68 = vector.broadcast %67 : vector<8x1xf32> to vector<8x8xf32>
    %69 = arith.mulf %66, %68 : vector<8x8xf32>
    %70 = arith.truncf %69 : vector<8x8xf32> to vector<8x8xbf16>
    %c0_25 = arith.constant 0 : index
    %c8 = arith.constant 8 : index
    %c0_26 = arith.constant 0 : index
    %71 = vector.load %arg5[%c0_25, %c8, %c0_26] : memref<1x32x32xbf16, #tpu.memory_space<vmem>>, vector<1x8x32xbf16>
    %72 = vector.shape_cast %71 : vector<1x8x32xbf16> to vector<8x32xbf16>
    %cst_27 = arith.constant dense<0.000000e+00> : vector<8x32xf32>
    %73 = tpu.matmul %70, %72, %cst_27 {dimension_numbers = #tpu.dot_dimension_numbers<[1], [0], [0], [1], [0, 0, 1, 1], [], []>} : vector<8x8xbf16>, vector<8x32xbf16>, vector<8x32xf32> -> vector<8x32xf32>
    %74 = arith.addf %51, %73 : vector<8x32xf32>
    %75 = vector.extract_strided_slice %17 {offsets = [0, 16], sizes = [8, 8], strides = [1, 1]} : vector<8x32xbf16> to vector<8x8xbf16>
    %76 = vector.extract_strided_slice %22 {offsets = [0, 16], sizes = [8, 8], strides = [1, 1]} : vector<8x32xbf16> to vector<8x8xbf16>
    %cst_28 = arith.constant dense<0.000000e+00> : vector<8x8xf32>
    %77 = tpu.matmul %75, %76, %cst_28 {dimension_numbers = #tpu.dot_dimension_numbers<[1], [1], [0], [0], [0, 0, 1, 0], [], []>} : vector<8x8xbf16>, vector<8x8xbf16>, vector<8x8xf32> -> vector<8x8xf32>
    %78 = vector.broadcast %6 : vector<1x8xf32> to vector<8x8xf32>
    %79 = arith.addf %77, %78 : vector<8x8xf32>
    %cst_29 = arith.constant dense<0xFF800000> : vector<8xf32>
    %80 = vector.multi_reduction <maximumf>, %79, %cst_29 [1] : vector<8x8xf32> to vector<8xf32>
    %81 = vector.shape_cast %80 : vector<8xf32> to vector<8x1xf32>
    %82 = vector.broadcast %81 : vector<8x1xf32> to vector<8x8xf32>
    %83 = arith.subf %79, %82 : vector<8x8xf32>
    %84 = math.exp %83 : vector<8x8xf32>
    %cst_30 = arith.constant dense<0.000000e+00> : vector<8xf32>
    %85 = vector.multi_reduction <add>, %84, %cst_30 [1] : vector<8x8xf32> to vector<8xf32>
    %86 = vector.shape_cast %85 : vector<8xf32> to vector<8x1xf32>
    %87 = arith.truncf %84 : vector<8x8xf32> to vector<8x8xbf16>
    %88 = vector.extract_strided_slice %27 {offsets = [0, 16], sizes = [8, 8], strides = [1, 1]} : vector<8x32xbf16> to vector<8x8xbf16>
    %cst_31 = arith.constant dense<0.000000e+00> : vector<8x8xf32>
    %89 = tpu.matmul %87, %88, %cst_31 {dimension_numbers = #tpu.dot_dimension_numbers<[1], [0], [0], [1], [0, 0, 1, 1], [], []>} : vector<8x8xbf16>, vector<8x8xbf16>, vector<8x8xf32> -> vector<8x8xf32>
    %90 = tpu.reciprocal %86 {approx = true} : vector<8x1xf32> -> vector<8x1xf32>
    %91 = vector.broadcast %90 : vector<8x1xf32> to vector<8x8xf32>
    %92 = arith.mulf %89, %91 : vector<8x8xf32>
    %93 = arith.truncf %92 : vector<8x8xf32> to vector<8x8xbf16>
    %c0_32 = arith.constant 0 : index
    %c16 = arith.constant 16 : index
    %c0_33 = arith.constant 0 : index
    %94 = vector.load %arg5[%c0_32, %c16, %c0_33] : memref<1x32x32xbf16, #tpu.memory_space<vmem>>, vector<1x8x32xbf16>
    %95 = vector.shape_cast %94 : vector<1x8x32xbf16> to vector<8x32xbf16>
    %cst_34 = arith.constant dense<0.000000e+00> : vector<8x32xf32>
    %96 = tpu.matmul %93, %95, %cst_34 {dimension_numbers = #tpu.dot_dimension_numbers<[1], [0], [0], [1], [0, 0, 1, 1], [], []>} : vector<8x8xbf16>, vector<8x32xbf16>, vector<8x32xf32> -> vector<8x32xf32>
    %97 = arith.addf %74, %96 : vector<8x32xf32>
    %98 = vector.extract_strided_slice %17 {offsets = [0, 24], sizes = [8, 8], strides = [1, 1]} : vector<8x32xbf16> to vector<8x8xbf16>
    %99 = vector.extract_strided_slice %22 {offsets = [0, 24], sizes = [8, 8], strides = [1, 1]} : vector<8x32xbf16> to vector<8x8xbf16>
    %cst_35 = arith.constant dense<0.000000e+00> : vector<8x8xf32>
    %100 = tpu.matmul %98, %99, %cst_35 {dimension_numbers = #tpu.dot_dimension_numbers<[1], [1], [0], [0], [0, 0, 1, 0], [], []>} : vector<8x8xbf16>, vector<8x8xbf16>, vector<8x8xf32> -> vector<8x8xf32>
    %101 = vector.broadcast %6 : vector<1x8xf32> to vector<8x8xf32>
    %102 = arith.addf %100, %101 : vector<8x8xf32>
    %cst_36 = arith.constant dense<0xFF800000> : vector<8xf32>
    %103 = vector.multi_reduction <maximumf>, %102, %cst_36 [1] : vector<8x8xf32> to vector<8xf32>
    %104 = vector.shape_cast %103 : vector<8xf32> to vector<8x1xf32>
    %105 = vector.broadcast %104 : vector<8x1xf32> to vector<8x8xf32>
    %106 = arith.subf %102, %105 : vector<8x8xf32>
    %107 = math.exp %106 : vector<8x8xf32>
    %cst_37 = arith.constant dense<0.000000e+00> : vector<8xf32>
    %108 = vector.multi_reduction <add>, %107, %cst_37 [1] : vector<8x8xf32> to vector<8xf32>
    %109 = vector.shape_cast %108 : vector<8xf32> to vector<8x1xf32>
    %110 = arith.truncf %107 : vector<8x8xf32> to vector<8x8xbf16>
    %111 = vector.extract_strided_slice %27 {offsets = [0, 24], sizes = [8, 8], strides = [1, 1]} : vector<8x32xbf16> to vector<8x8xbf16>
    %cst_38 = arith.constant dense<0.000000e+00> : vector<8x8xf32>
    %112 = tpu.matmul %110, %111, %cst_38 {dimension_numbers = #tpu.dot_dimension_numbers<[1], [0], [0], [1], [0, 0, 1, 1], [], []>} : vector<8x8xbf16>, vector<8x8xbf16>, vector<8x8xf32> -> vector<8x8xf32>
    %113 = tpu.reciprocal %109 {approx = true} : vector<8x1xf32> -> vector<8x1xf32>
    %114 = vector.broadcast %113 : vector<8x1xf32> to vector<8x8xf32>
    %115 = arith.mulf %112, %114 : vector<8x8xf32>
    %116 = arith.truncf %115 : vector<8x8xf32> to vector<8x8xbf16>
    %c0_39 = arith.constant 0 : index
    %c24 = arith.constant 24 : index
    %c0_40 = arith.constant 0 : index
    %117 = vector.load %arg5[%c0_39, %c24, %c0_40] : memref<1x32x32xbf16, #tpu.memory_space<vmem>>, vector<1x8x32xbf16>
    %118 = vector.shape_cast %117 : vector<1x8x32xbf16> to vector<8x32xbf16>
    %cst_41 = arith.constant dense<0.000000e+00> : vector<8x32xf32>
    %119 = tpu.matmul %116, %118, %cst_41 {dimension_numbers = #tpu.dot_dimension_numbers<[1], [0], [0], [1], [0, 0, 1, 1], [], []>} : vector<8x8xbf16>, vector<8x32xbf16>, vector<8x32xf32> -> vector<8x32xf32>
    %120 = arith.addf %97, %119 : vector<8x32xf32>
    %121 = arith.addf %4, %120 : vector<8x32xf32>
    %122 = vector.extract_strided_slice %8 {offsets = [3, 0], sizes = [1, 32], strides = [1, 1]} : vector<9x32xf32> to vector<1x32xf32>
    %123 = vector.broadcast %122 : vector<1x32xf32> to vector<8x32xf32>
    %124 = arith.addf %121, %123 : vector<8x32xf32>
    %125 = vector.extract_strided_slice %8 {offsets = [5, 0], sizes = [1, 32], strides = [1, 1]} : vector<9x32xf32> to vector<1x32xf32>
    %126 = vector.extract_strided_slice %8 {offsets = [6, 0], sizes = [1, 32], strides = [1, 1]} : vector<9x32xf32> to vector<1x32xf32>
    %cst_42 = arith.constant dense<0.000000e+00> : vector<8xf32>
    %127 = vector.multi_reduction <add>, %124, %cst_42 [1] : vector<8x32xf32> to vector<8xf32>
    %128 = vector.shape_cast %127 : vector<8xf32> to vector<8x1xf32>
    %cst_43 = arith.constant 3.200000e+01 : f32
    %129 = vector.broadcast %cst_43 : f32 to vector<8x1xf32>
    %130 = arith.divf %128, %129 : vector<8x1xf32>
    %131 = vector.broadcast %130 : vector<8x1xf32> to vector<8x32xf32>
    %132 = arith.subf %124, %131 : vector<8x32xf32>
    %133 = arith.mulf %132, %132 : vector<8x32xf32>
    %cst_44 = arith.constant dense<0.000000e+00> : vector<8xf32>
    %134 = vector.multi_reduction <add>, %133, %cst_44 [1] : vector<8x32xf32> to vector<8xf32>
    %135 = vector.shape_cast %134 : vector<8xf32> to vector<8x1xf32>
    %cst_45 = arith.constant 3.200000e+01 : f32
    %136 = vector.broadcast %cst_45 : f32 to vector<8x1xf32>
    %137 = arith.divf %135, %136 : vector<8x1xf32>
    %138 = vector.broadcast %130 : vector<8x1xf32> to vector<8x32xf32>
    %139 = arith.subf %124, %138 : vector<8x32xf32>
    %cst_46 = arith.constant 9.99999974E-6 : f32
    %140 = vector.broadcast %cst_46 : f32 to vector<8x1xf32>
    %141 = arith.addf %137, %140 : vector<8x1xf32>
    %142 = math.rsqrt %141 : vector<8x1xf32>
    %143 = vector.broadcast %142 : vector<8x1xf32> to vector<8x32xf32>
    %144 = arith.mulf %139, %143 : vector<8x32xf32>
    %145 = vector.broadcast %125 : vector<1x32xf32> to vector<8x32xf32>
    %146 = arith.mulf %144, %145 : vector<8x32xf32>
    %147 = vector.broadcast %126 : vector<1x32xf32> to vector<8x32xf32>
    %148 = arith.addf %146, %147 : vector<8x32xf32>
    %149 = arith.truncf %148 : vector<8x32xf32> to vector<8x32xbf16>
    %c0_47 = arith.constant 0 : index
    %c0_48 = arith.constant 0 : index
    %c0_49 = arith.constant 0 : index
    %150 = vector.load %arg6[%c0_47, %c0_48, %c0_49] : memref<1x32x64xbf16, #tpu.memory_space<vmem>>, vector<1x32x64xbf16>
    %151 = vector.shape_cast %150 : vector<1x32x64xbf16> to vector<32x64xbf16>
    %cst_50 = arith.constant dense<0.000000e+00> : vector<8x64xf32>
    %152 = tpu.matmul %149, %151, %cst_50 {dimension_numbers = #tpu.dot_dimension_numbers<[1], [0], [0], [1], [0, 0, 1, 1], [], []>} : vector<8x32xbf16>, vector<32x64xbf16>, vector<8x64xf32> -> vector<8x64xf32>
    %c0_51 = arith.constant 0 : index
    %c0_52 = arith.constant 0 : index
    %c0_53 = arith.constant 0 : index
    %153 = vector.load %arg9[%c0_51, %c0_52, %c0_53] : memref<1x1x64xf32, #tpu.memory_space<vmem>>, vector<1x1x64xf32>
    %154 = vector.shape_cast %153 : vector<1x1x64xf32> to vector<1x64xf32>
    %155 = vector.broadcast %154 : vector<1x64xf32> to vector<8x64xf32>
    %156 = arith.addf %152, %155 : vector<8x64xf32>
    %cst_54 = arith.constant 0.000000e+00 : f32
    %157 = vector.broadcast %cst_54 : f32 to vector<8x64xf32>
    %158 = arith.maximumf %156, %157 : vector<8x64xf32>
    %159 = arith.truncf %158 : vector<8x64xf32> to vector<8x64xbf16>
    %c0_55 = arith.constant 0 : index
    %c0_56 = arith.constant 0 : index
    %c0_57 = arith.constant 0 : index
    %160 = vector.load %arg7[%c0_55, %c0_56, %c0_57] : memref<1x64x32xbf16, #tpu.memory_space<vmem>>, vector<1x64x32xbf16>
    %161 = vector.shape_cast %160 : vector<1x64x32xbf16> to vector<64x32xbf16>
    %cst_58 = arith.constant dense<0.000000e+00> : vector<8x32xf32>
    %162 = tpu.matmul %159, %161, %cst_58 {dimension_numbers = #tpu.dot_dimension_numbers<[1], [0], [0], [1], [0, 0, 1, 1], [], []>} : vector<8x64xbf16>, vector<64x32xbf16>, vector<8x32xf32> -> vector<8x32xf32>
    %163 = vector.extract_strided_slice %8 {offsets = [4, 0], sizes = [1, 32], strides = [1, 1]} : vector<9x32xf32> to vector<1x32xf32>
    %164 = vector.broadcast %163 : vector<1x32xf32> to vector<8x32xf32>
    %165 = arith.addf %162, %164 : vector<8x32xf32>
    %166 = arith.addf %148, %165 : vector<8x32xf32>
    %167 = vector.extract_strided_slice %8 {offsets = [7, 0], sizes = [1, 32], strides = [1, 1]} : vector<9x32xf32> to vector<1x32xf32>
    %168 = vector.extract_strided_slice %8 {offsets = [8, 0], sizes = [1, 32], strides = [1, 1]} : vector<9x32xf32> to vector<1x32xf32>
    %cst_59 = arith.constant dense<0.000000e+00> : vector<8xf32>
    %169 = vector.multi_reduction <add>, %166, %cst_59 [1] : vector<8x32xf32> to vector<8xf32>
    %170 = vector.shape_cast %169 : vector<8xf32> to vector<8x1xf32>
    %cst_60 = arith.constant 3.200000e+01 : f32
    %171 = vector.broadcast %cst_60 : f32 to vector<8x1xf32>
    %172 = arith.divf %170, %171 : vector<8x1xf32>
    %173 = vector.broadcast %172 : vector<8x1xf32> to vector<8x32xf32>
    %174 = arith.subf %166, %173 : vector<8x32xf32>
    %175 = arith.mulf %174, %174 : vector<8x32xf32>
    %cst_61 = arith.constant dense<0.000000e+00> : vector<8xf32>
    %176 = vector.multi_reduction <add>, %175, %cst_61 [1] : vector<8x32xf32> to vector<8xf32>
    %177 = vector.shape_cast %176 : vector<8xf32> to vector<8x1xf32>
    %cst_62 = arith.constant 3.200000e+01 : f32
    %178 = vector.broadcast %cst_62 : f32 to vector<8x1xf32>
    %179 = arith.divf %177, %178 : vector<8x1xf32>
    %180 = vector.broadcast %172 : vector<8x1xf32> to vector<8x32xf32>
    %181 = arith.subf %166, %180 : vector<8x32xf32>
    %cst_63 = arith.constant 9.99999974E-6 : f32
    %182 = vector.broadcast %cst_63 : f32 to vector<8x1xf32>
    %183 = arith.addf %179, %182 : vector<8x1xf32>
    %184 = math.rsqrt %183 : vector<8x1xf32>
    %185 = vector.broadcast %184 : vector<8x1xf32> to vector<8x32xf32>
    %186 = arith.mulf %181, %185 : vector<8x32xf32>
    %187 = vector.broadcast %167 : vector<1x32xf32> to vector<8x32xf32>
    %188 = arith.mulf %186, %187 : vector<8x32xf32>
    %189 = vector.broadcast %168 : vector<1x32xf32> to vector<8x32xf32>
    %190 = arith.addf %188, %189 : vector<8x32xf32>
    %c0_64 = arith.constant 0 : index
    %c0_65 = arith.constant 0 : index
    %c0_66 = arith.constant 0 : index
    %191 = vector.load %arg10[%c0_64, %c0_65, %c0_66] : memref<1x8x32xf32, #tpu.memory_space<vmem>>, vector<1x8x32xf32>
    %192 = vector.shape_cast %191 : vector<1x8x32xf32> to vector<8x32xf32>
    %193 = vector.shape_cast %190 : vector<8x32xf32> to vector<1x8x32xf32>
    tpu.vector_store %arg10[%c0_64, %c0_65, %c0_66], %193 {strides = array<i32>} : memref<1x8x32xf32, #tpu.memory_space<vmem>>, vector<1x8x32xf32>,
    return
  }
  func.func @transform_0(%arg0: i32, %arg1: i32) -> (i32, i32, i32) {
    %c0_i32 = arith.constant 0 : i32
    %c0_i32_0 = arith.constant 0 : i32
    %c0_i32_1 = arith.constant 0 : i32
    return %arg0, %c0_i32, %c0_i32_0 : i32, i32, i32
  }
  func.func @transform_1(%arg0: i32, %arg1: i32) -> (i32, i32, i32) {
    %c0_i32 = arith.constant 0 : i32
    %c0_i32_0 = arith.constant 0 : i32
    %c0_i32_1 = arith.constant 0 : i32
    return %arg0, %c0_i32, %c0_i32_0 : i32, i32, i32
  }
  func.func @transform_2(%arg0: i32, %arg1: i32) -> (i32, i32, i32) {
    %c0_i32 = arith.constant 0 : i32
    %c0_i32_0 = arith.constant 0 : i32
    %c0_i32_1 = arith.constant 0 : i32
    return %arg1, %c0_i32, %c0_i32_0 : i32, i32, i32
  }
  func.func @transform_3(%arg0: i32, %arg1: i32) -> (i32, i32, i32) {
    %c0_i32 = arith.constant 0 : i32
    %c0_i32_0 = arith.constant 0 : i32
    %c0_i32_1 = arith.constant 0 : i32
    return %arg1, %c0_i32, %c0_i32_0 : i32, i32, i32
  }
  func.func @transform_4(%arg0: i32, %arg1: i32) -> (i32, i32, i32) {
    %c0_i32 = arith.constant 0 : i32
    %c0_i32_0 = arith.constant 0 : i32
    %c0_i32_1 = arith.constant 0 : i32
    return %arg1, %c0_i32, %c0_i32_0 : i32, i32, i32
  }
  func.func @transform_5(%arg0: i32, %arg1: i32) -> (i32, i32, i32) {
    %c0_i32 = arith.constant 0 : i32
    %c0_i32_0 = arith.constant 0 : i32
    %c0_i32_1 = arith.constant 0 : i32
    return %arg1, %c0_i32, %c0_i32_0 : i32, i32, i32
  }
  func.func @transform_6(%arg0: i32, %arg1: i32) -> (i32, i32, i32) {
    %c0_i32 = arith.constant 0 : i32
    %c0_i32_0 = arith.constant 0 : i32
    %c0_i32_1 = arith.constant 0 : i32
    return %arg1, %c0_i32, %c0_i32_0 : i32, i32, i32
  }
  func.func @transform_7(%arg0: i32, %arg1: i32) -> (i32, i32, i32) {
    %c0_i32 = arith.constant 0 : i32
    %c0_i32_0 = arith.constant 0 : i32
    %c0_i32_1 = arith.constant 0 : i32
    return %arg1, %c0_i32, %c0_i32_0 : i32, i32, i32
  }
  func.func @transform_8(%arg0: i32, %arg1: i32) -> (i32, i32, i32) {
    %c0_i32 = arith.constant 0 : i32
    %c0_i32_0 = arith.constant 0 : i32
    %c0_i32_1 = arith.constant 0 : i32
    return %arg0, %c0_i32, %c0_i32_0 : i32, i32, i32
  }
}

</mosaic_0001>

<bundles_post_ra>
// kernel: encoder_forward.1
= control target key start
LH: loop header
LB: loop body
LE: loop exit
PB: predicated region body
PF: predicated region fallthrough
CT: control target
= control target key end

     0   :  { %s1749_s0 = inlined_call_operand.vmem [shape: f32[2,8,32], index: 0, kind: input, shape index: {}]   ;;  %s1750_s1 = inlined_call_operand.vmem [shape: f32[2,1,8], index: 1, kind: input, shape index: {}]   ;;  %s1751_s2 = inlined_call_operand.vmem [shape: bf16[2,32,96], index: 2, kind: input, shape index: {}]   ;;  %s1752_s3 = inlined_call_operand.vmem [shape: bf16[2,32,32], index: 3, kind: input, shape index: {}]   ;;  %s1753_s4 = inlined_call_operand.vmem [shape: bf16[2,32,64], index: 4, kind: input, shape index: {}]   ;;  %s1754_s5 = inlined_call_operand.vmem [shape: bf16[2,64,32], index: 5, kind: input, shape index: {}]   ;;  %s1755_s6 = inlined_call_operand.vmem [shape: f32[2,9,32], index: 6, kind: input, shape index: {}]   ;;  %s1756_s7 = inlined_call_operand.vmem [shape: f32[2,1,64], index: 7, kind: input, shape index: {}]   ;;  %s1757_s8 = inlined_call_operand.hbm [shape: f32[2,8,32], index: 8, kind: output, shape index: {}]  }
   0x1   :  { %1770 = sst [smem:[#allocation15_spill]] %s1749_s0 }
   0x2   :  { %1771 = sst [smem:[#allocation16_spill]] %s1757_s8 }
   0x3   :  { %13 = vsyncpa [#allocation3], 0 }
   0x4   :  { %15 = vsyncpa [#allocation3 + $0x1], 0  ;;  %s1488_s27 = smov 0   ;;  %s1490_s28 = smov 0  }
   0x5   :  { %s1492_s29 = smov 0   ;;  %s1494_s30 = smov 0  }
   0x6   :  { %s1496_s9 = smov 0   ;;  %s1498_s10 = smov 0  }
   0x7   :  { %s1500_s11 = smov 0   ;;  %s1502_s12 = smov 0  }
   0x8 LB: > { %1772 = sst [smem:[#allocation5_spill]] %s1400_s27  ;;  %s1143_s13 = sadd.s32 4294967295, %s1428_s12   ;;  %s1428_s12 = sphi %s1502_s12, %s21_s12   ;;  %s1424_s11 = sphi %s1500_s11, %s1798_s11   ;;  %s1420_s10 = sphi %s1498_s10, %s1797_s10   ;;  %s1416_s9 = sphi %s1496_s9, %s1796_s9   ;;  %s1412_s30 = sphi %s1494_s30, %s1795_s30   ;;  %s1408_s29 = sphi %s1492_s29, %s1794_s29   ;;  %s1404_s28 = sphi %s1490_s28, %s1800_s28   ;;  %s1400_s27 = sphi %s1488_s27, %s1799_s27  }
   0x9   : > { %1773 = sst [smem:[#allocation6_spill]] %s1408_s29  ;;  %s1144_s14 = sadd.s32 4294967294, %s1428_s12  }
   0xa   : > { %1774 = sst [smem:[#allocation7_spill]] %s1420_s10  ;;  %s30_s15 = sadd.s32 1, %s1420_s10 }
   0xb   : > { %1775 = sst [smem:[#allocation8_spill]] %s1424_s11  ;;  %p31_p0 = scmp.ge.s32.totalorder %s30_s15, 2 }
   0xc   : > { %1776 = sst [smem:[#allocation9_spill]] %s1428_s12  ;;  %s33_s16 = sadd.s32 1, %s1424_s11 }
   0xd   : > { %p258_p1 = scmp.ne.s32.totalorder %s1408_s29, %s1404_s28  ;;  %p259_p2 = scmp.eq.s32.totalorder %s1143_s13, 3 }
   0xe   : > { %s1802_s15 = smov (%p31_p0, %s30_s15), 0  ;;  %s1804_s16 = smov (!%p31_p0, %s33_s16), %s1424_s11 }
   0xf   : > { %1777 = sst [smem:[#allocation10_spill]] %s1802_s15  ;;  %p1537_p3 = por %p259_p2, %p258_p1 }
  0x10   : > { %p264_p4 = scmp.ne.s32.totalorder %s1404_s28, %s1400_s27  ;;  %p35_p5 = scmp.ge.s32.totalorder %s1804_s16, 2 }
  0x11   : > { %s1778_s17 = scalar_select %p1537_p3, 1, 0 }
  0x12   : > { %p265_p6 = scmp.eq.s32.totalorder %s1144_s14, 3  ;;  %p1147_p7 = scmp.ge.s32.totalorder %s1428_s12, 1 }
  0x13   : > { %1779 = sst [smem:[#allocation11_spill]] %s1778_s17  ;;  %p342_p8 = scmp.lt.s32.totalorder %s1428_s12, 5 }
  0x14   : > { %s1806_s16 = smov (%p35_p5, %s1804_s16), 0  ;;  %p1547_p9 = por %p265_p6, %p264_p4 }
  0x15   : > { %1780 = sst [smem:[#allocation12_spill]] %s1806_s16  ;;  %p343_p10 = pnand %p1147_p7, %p342_p8 }
  0x16   : > { %s1781_s18 = scalar_select %p1547_p9, 1, 0 }
  0x17   : > { %s245_s19 = ssub.s32 %s1424_s11, %s1806_s16  ;;  %s248_s20 = sadd.s32 1, %s1408_s29 }
  0x18   : > { %1782 = sst [smem:[#allocation13_spill]] %s1781_s18  ;;  %p246_p11 = scmp.eq.s32.totalorder %s245_s19, 0 }
  0x19   : > { %346 = sbr.rel (%p343_p10) target bundleno = 2071 (0x817), region = 52  ;;  %s1759_s22 = sand.u32 (!%p343_p10), 1, %s1404_s28  }
  0x1a   : > { %s1555_s21 = scalar_select %p246_p11, %s1408_s29, %s248_s20  }
  0x1b   : > { %p406_p12 = scmp.lt.s32.totalorder (!%p343_p10), %s1416_s9, 1  ;;  %s1148_s23 = sshll.u32 (!%p343_p10), %s1759_s22, 3 }
  0x1c   : > { %1783 = sst [smem:[#allocation14_spill]] %s1555_s21  ;;  %p413_p13 = scmp.lt.s32.totalorder (!%p343_p10), %s1412_s30, 1 }
  0x1d   : > { %s1784_s0 = sld [smem:[#allocation15_spill]] (!%p343_p10)  ;;  %p1160_p0 = scmp.ne.s32.totalorder (!%p343_p10), %s1412_s30, 0 }
  0x1e   : > { %s1563_s24 = scalar_select %p406_p12, %s1416_s9, 1 }
  0x1f   : > { %s1566_s25 = scalar_select %p413_p13, %s1412_s30, 1 }
  0x20   : > { %s1149_s26 = sshll.u32 %s1563_s24, 3 }
  0x21   : > { %s1212_s22 = sshll.u32 %s1566_s25, 4  ;;  %s1215_s13 = sshll.u32 %s1566_s25, 5 }
  0x22   : > { %s417_s21 = scalar_lea.vmem %s1751_s2, %s1212_s22  ;;  %s1583_s27 = scalar_lea.vmem %s1752_s3, %s1212_s22 }
  0x23   : > { %s409_s15 = scalar_lea.vmem %s1784_s0, %s1149_s26  ;;  %s1588_s8 = scalar_lea.vmem %s1753_s4, %s1212_s22 }
  0x24   : > { %s1594_s16 = scalar_lea.vmem %s1754_s5, %s1215_s13  ;;  %s1599_s10 = scalar_lea.vmem %s1755_s6, %s1212_s22 }
  0x25   : > { %s440_s18 = scalar_lea.vmem %s1756_s7, %s1566_s25  ;;  %s1605_s0 = scalar_lea.vmem [#allocation2], %s1148_s23 }
  0x26   : > { %445 = sbr.rel (%p1160_p0) target bundleno = 45 (0x2d), region = 56 }
  0x2b   : > { %v446_v0 = vld [vmem:[%s409_s15] sm:$0xff]  ;;  %vm447_vm0 = vcmask 261120  }
  0x2c   : > { %448 = vst.msk [vmem:[%s1605_s0] sm:$0xff] %vm447_vm0, %v446_v0 }
  0x2d PF: > { %v1218_v1 = vld [vmem:[%s417_s21 + $0x8] sm:$0xff]  ;;  %v1610_v2 = vld [vmem:[%s1599_s10] sm:$0xff]  ;;  %s1430_s30 = smov 64   ;;  %s1431_s12 = smov 32   ;;  %vm470_vm1 = vcmask 261120   ;;  %vm550_vm2 = vcmask 1043456  }
  0x2e   : > { %480 = vmatpush.bf16.msra.mxu0 %v1218_v1  ;;  %v1217_v3 = vld [vmem:[%s417_s21] sm:$0xff]  ;;  %v497_v5 = vperm.slane %v1610_v2, 2  ;;  %v490_v6 = vperm.slane %v1610_v2, 1  ;;  %v487_v17 = vperm.slane %v1610_v2, 0  ;;  %s1432_s15 = smov 96   ;;  %s1433_s17 = smov 88  }
  0x2f   : > { %s1434_s21 = smov 120   ;;  %s1435_s22 = smov 80   ;;  %vm512_vm3 = vcmask 64512   ;;  %v570_v27 = vld [vmem:[%s1583_s27] sm:$0xf]  ;;  %vm934_vm8 = vcmask 523264  }
  0x30   : > { %499 = vrot.lane.b32.xlu1 %v497_v5, %s1430_s30  ;;  %492 = vrot.lane.b32.xlu0 %v490_v6, %s1431_s12  ;;  %s1436_s23 = smov 72   ;;  %s1437_s19 = smov 112   ;;  %v655_v29 = vsel %vm550_vm2, %v570_v27, 0 }
  0x31   : > { %s1438_s13 = smov 56   ;;  %s1785_s20 = scalar_lea.vmem %s1750_s1, %s1563_s24 }
  0x32   : > { %481 = vmatpush.bf16.msra.mxu0 %v1217_v3  ;;  %v1645_v41 = vld [vmem:[%s1785_s20] ss:$0 sm:$0xff]  ;;  %s1439_s24 = smov 104   ;;  %s1440_s11 = smov 48  }
  0x33   : > { %v1613_v4 = vld [vmem:[%s1605_s0] sm:$0xff]  ;;  %s1441_s29 = smov 40   ;;  %s1209_s25 = sshll.u32 %s1416_s9, 3 }
  0x34   : > { %v453_v7 = vpack.c.bf16 %v1613_v4, %v1613_v4  ;;  %s1789_s9 = sand.u32 1, %s1404_s28  }
  0x36   : > { %1169 = vmatmul.msk.bf16.vlgmr.msra.gmra.mxu0 %vm470_vm1, %v453_v7 }
  0xa2   : > { %v500_v8 = vpop.permute.xlu1 %499  ;;  %v493_v9 = vpop.permute.xlu0 %492 }
  0xb3   : > { %v483_v10 = vpop.f32.mrf.mxu0 }
  0xb4   : > { %v495_v11 = vadd.f32 %v493_v9, %v483_v10  ;;  %v502_v12 = vadd.f32 %v500_v8, %v483_v10  ;;  %v488_v21 = vadd.f32 %v487_v17, %v483_v10 }
  0xb6   : > { %v496_v13 = vpack.c.bf16 %v495_v11, %v495_v11  ;;  %v503_v14 = vpack.c.bf16 %v502_v12, %v502_v12  ;;  %v489_v22 = vpack.c.bf16 %v488_v21, %v488_v21 }
  0xb8   : > { %v508_v15 = vunpack.c.l.b16 %v496_v13  ;;  %v543_v16 = vunpack.c.l.b16 %v503_v14  ;;  %v572_v23 = vunpack.c.l.b16 %v489_v22 }
  0xba   : > { %v509_v18 = vpack.c.b16 %v508_v15, %v508_v15  ;;  %v1621_v19 = vpack.c.b16 %v543_v16, %v543_v16  ;;  %v1624_v24 = vpack.c.b16 %v572_v23, %v572_v23 }
  0xbb   : > { %v485_v20 = vpop.f32.mrf.mxu0 }
  0xbc   : > { %545 = vrot.lane.b32.xlu2 %v1621_v19, %s1430_s30  ;;  %510 = vrot.lane.b32.xlu0 %v509_v18, %s1432_s15  ;;  %s1786_s30 = sld [smem:[#allocation16_spill]] }
  0xc2   : > { %s1787_s15 = smov %s1786_s30  ;;  %s990_s12 = scalar_lea.hbm %s1786_s30, %s1209_s25 }
  0xc4   : > { %576 = vrot.lane.b32.xlu0 %v509_v18, %s1433_s17 }
  0xcc   : > { %574 = vrot.lane.b32.xlu0 %v1624_v24, %s1434_s21  ;;  %s992_s21 = sshll.u32 %s1605_s0, 4  ;;  %s993_s21 = int_to_ptr.vmem [resolvable:$true] %s992_s21 }
  0xd4   : > { %672 = vrot.lane.b32.xlu0 %v509_v18, %s1435_s22  ;;  %s994_s22 = sshll.u32 %s990_s12, 4  ;;  %s995_s22 = int_to_ptr.hbm [resolvable:$true] %s994_s22 }
  0xdc   : > { %750 = vrot.lane.b32.xlu0 %v509_v18, %s1436_s23  ;;  %s980_s23 = scalar_lea.sflag [#allocation3], %s1789_s9 }
  0xe4   : > { %670 = vrot.lane.b32.xlu0 %v1624_v24, %s1437_s19  ;;  %s1348_s19 = sshra.s32 %s995_s22, 4  ;;  %s1349_s19 = int_to_ptr.hbm [resolvable:$true] %s1348_s19 }
  0xe5   : > { %p1355_p5 = scmp.lt.s32.totalorder %s1349_s19, %s1787_s15 }
  0xec   : > { %607 = vrot.lane.b32.xlu0 %v1621_v19, %s1438_s13  ;;  %s1350_s13 = scalar_lea.hbm %s1349_s19, 8 }
  0xed   : > { %p1351_p1 = scmp.ne.s32.totalorder %s1349_s19, %s1350_s13 }
  0xef   : > { %p1352_p2 = pnand %p1351_p1, %p1537_p3 }
  0xf1   : > { %p1353_p4 = pneg %p1352_p2 }
 0x116   : > { %v546_v25 = vpop.permute.xlu2 %545 }
 0x117   : > { %v552_v26 = vsel %vm550_vm2, %v546_v25, 0 }
 0x118   : > { %561 = vmatpush.bf16.msra.mxu2 %v552_v26 }
 0x12e   : > { %v511_v28 = vpop.permute.xlu0 %510 }
 0x12f   : > { %v517_v30 = vsel %vm512_vm3, %v511_v28, 0  ;;  %v727_v28 = vld [vmem:[%s1583_s27 + $0x8] sm:$0xf] }
 0x130   : > { %526 = vmatpush.bf16.xpose.msra.mxu1 %v517_v30 }
 0x136   : > { %v577_v31 = vpop.permute.xlu0 %576 }
 0x137   : > { %1170 = vmatmul.msk.bf16.vlgmr.msra.gmra.mxu1 %vm512_vm3, %v489_v22  ;;  %v582_v32 = vsel %vm512_vm3, %v577_v31, 0  ;;  %v631_v22 = vld [vmem:[%s1583_s27 + $0x4] sm:$0xf] }
 0x138   : > { %664 = vmatpush.bf16.msrb.mxu1 %v655_v29  ;;  %591 = vmatpush.bf16.xpose.msra.mxu3 %v582_v32  ;;  %v636_v23 = vsel %vm550_vm2, %v631_v22, 0  ;;  %v732_v29 = vsel %vm550_vm2, %v727_v28, 0  ;;  %v1224_v22 = vld [vmem:[%s1594_s16 + $0x18] sm:$0xff] }
 0x139   : > { %645 = vmatpush.bf16.msrb.mxu0 %v636_v23 }
 0x13d   : > { %741 = vmatpush.bf16.msra.mxu0 %v732_v29 }
 0x13e   : > { %v575_v33 = vpop.permute.xlu0 %574 }
 0x13f   : > { %1172 = vmatmul.msk.bf16.vlgmr.msra.gmra.mxu3 %vm512_vm3, %v575_v33 }
 0x146   : > { %v673_v34 = vpop.permute.xlu0 %672 }
 0x147   : > { %v678_v35 = vsel %vm512_vm3, %v673_v34, 0 }
 0x148   : > { %687 = vmatpush.bf16.xpose.msrb.mxu3 %v678_v35 }
 0x14e   : > { %v751_v36 = vpop.permute.xlu0 %750 }
 0x14f   : > { %v756_v37 = vsel %vm512_vm3, %v751_v36, 0 }
 0x150   : > { %765 = vmatpush.bf16.xpose.msra.mxu1 %v756_v37 }
 0x156   : > { %v671_v38 = vpop.permute.xlu0 %670 }
 0x157   : > { %1176 = vmatmul.msk.bf16.vlgmr.msrb.gmra.mxu3 %vm512_vm3, %v671_v38 }
 0x15e   : > { %v608_v39 = vpop.permute.xlu0 %607 }
 0x15f   : > { %v613_v40 = vsel %vm550_vm2, %v608_v39, 0 }
 0x160   : > { %622 = vmatpush.bf16.msrb.mxu2 %v613_v40 }
 0x1b4   : > { %v528_v42 = vpop.f32.mrf.mxu1 }
 0x1b5   : > { %v529_v43 = vadd.f32 %v1645_v41, %v528_v42 }
 0x1b7   : > { %v532_v44 = vsel %vm512_vm3, %v529_v43, -inf }
 0x1b8   : > { %533 = vmax.xlane.f32.xlu1 %v532_v44 }
 0x1bc   : > { %v530_v45 = vpop.f32.mrf.mxu1 }
 0x1c2   : > { %v593_v46 = vpop.f32.mrf.mxu3 }
 0x1c3   : > { %v594_v47 = vadd.f32 %v1645_v41, %v593_v46 }
 0x1c5   : > { %v597_v48 = vsel %vm512_vm3, %v594_v47, -inf }
 0x1c6   : > { %598 = vmax.xlane.f32.xlu1 %v597_v48 }
 0x1ca   : > { %v595_v49 = vpop.f32.mrf.mxu3 }
 0x1da   : > { %v689_v50 = vpop.f32.mrf.mxu3 }
 0x1db   : > { %v690_v51 = vadd.f32 %v1645_v41, %v689_v50 }
 0x1dd   : > { %v693_v52 = vsel %vm512_vm3, %v690_v51, -inf }
 0x1de   : > { %694 = vmax.xlane.f32.xlu0 %v693_v52 }
 0x1e2   : > { %v691_v53 = vpop.f32.mrf.mxu3 }
 0x22b   : > { %v534_v54 = vpop.xlane.xlu1 %533 }
 0x22c   : > { %v535_v55 = vsub.f32 %v529_v43, %v534_v54 }
 0x22e   : > { %v536_v56 = vmul.f32 1.442695, %v535_v55  ;;  %v805_v55 = vld [vmem:[%s1583_s27 + $0xc] sm:$0xf] }
 0x230   : > { %1312 = vpow2.f32 %v536_v56  ;;  %v810_v56 = vsel %vm550_vm2, %v805_v55, 0 }
 0x236   : > { %v1313_v57 = vpop.eup %1312 }
 0x237   : > { %v538_v58 = vsel %vm512_vm3, %v1313_v57, 0.0  ;;  %v541_v59 = vpack.c.bf16 %v1313_v57, %v1313_v57 }
 0x238   : > { %539 = vadd.xlane.f32.xlu2 %v538_v58 }
 0x239   : > { %1171 = vmatmul.msk.bf16.vlgmr.msra.gmra.mxu2 %vm512_vm3, %v541_v59  ;;  %v599_v60 = vpop.xlane.xlu1 %598 }
 0x23a   : > { %v600_v61 = vsub.f32 %v594_v47, %v599_v60 }
 0x23c   : > { %v601_v62 = vmul.f32 1.442695, %v600_v61 }
 0x23e   : > { %1314 = vpow2.f32 %v601_v62 }
 0x244   : > { %v1315_v63 = vpop.eup %1314 }
 0x245   : > { %v606_v0 = vpack.c.bf16 %v1315_v63, %v1315_v63  ;;  %v603_v8 = vsel %vm512_vm3, %v1315_v63, 0.0 }
 0x249   : > { %1173 = vmatmul.msk.bf16.vlgmr.msrb.gmra.mxu2 %vm512_vm3, %v606_v0 }
 0x250   : > { %748 = vrot.lane.b32.xlu2 %v1624_v24, %s1439_s24 }
 0x251   : > { %v695_v1 = vpop.xlane.xlu0 %694 }
 0x252   : > { %v696_v3 = vsub.f32 %v690_v51, %v695_v1  ;;  %v827_v1 = vperm.slane %v1610_v2, 3 }
 0x254   : > { %v697_v5 = vmul.f32 1.442695, %v696_v3 }
 0x256   : > { %1316 = vpow2.f32 %v697_v5 }
 0x258   : > { %703 = vrot.lane.b32.xlu2 %v1621_v19, %s1440_s11 }
 0x25c   : > { %v1317_v6 = vpop.eup %1316 }
 0x25d   : > { %v699_v7 = vsel %vm512_vm3, %v1317_v6, 0.0  ;;  %v702_v16 = vpack.c.bf16 %v1317_v6, %v1317_v6 }
 0x25e   : > { %700 = vadd.xlane.f32.xlu0 %v699_v7 }
 0x281   : > { %604 = vadd.xlane.f32.xlu2 %v603_v8  ;;  %v1442_v8 = vmov 32.0  }
 0x2ab   : > { %v540_v9 = vpop.xlane.xlu2 %539 }
 0x2ac   : > { %1318 = vrcp.f32 %v540_v9 }
 0x2b2   : > { %v1319_v12 = vpop.eup %1318 }
 0x2b3   : > { %v749_v10 = vpop.permute.xlu2 %748 }
 0x2bb   : > { %v704_v11 = vpop.permute.xlu2 %703 }
 0x2bc   : > { %v709_v13 = vsel %vm550_vm2, %v704_v11, 0  ;;  %v563_v14 = vpop.f32.mrf.mxu2 }
 0x2bd   : > { %v568_v15 = vmul.f32 %v1319_v12, %v563_v14  ;;  %718 = vmatpush.bf16.msra.mxu2 %v709_v13 }
 0x2bf   : > { %v569_v17 = vpack.c.bf16 %v568_v15, %v568_v15 }
 0x2c0   : > { %1177 = vmatmul.msk.bf16.vlgmr.msra.gmra.mxu2 %vm512_vm3, %v702_v16 }
 0x2c1   : > { %1175 = vmatmul.msk.bf16.vlgmr.msrb.gmra.mxu1 %vm512_vm3, %v569_v17  ;;  %819 = vmatpush.bf16.msrb.mxu2 %v810_v56 }
 0x2c2   : > { %942 = vmatpush.bf16.msrb.mxu1 %v1224_v22 }
 0x2c4   : > { %v565_v18 = vpop.f32.mrf.mxu2 }
 0x2cc   : > { %v624_v20 = vpop.f32.mrf.mxu2 }
 0x2d1   : > { %1179 = vmatmul.msk.bf16.vlgmr.msra.gmra.mxu1 %vm512_vm3, %v749_v10  ;;  %v701_v30 = vpop.xlane.xlu0 %700 }
 0x2d4   : > { %v626_v21 = vpop.f32.mrf.mxu2 }
 0x2d5   : > { %v1219_v21 = vld [vmem:[%s1588_s8] sm:$0xff] }
 0x2f4   : > { %v605_v24 = vpop.xlane.xlu2 %604 }
 0x2f5   : > { %1320 = vrcp.f32 %v605_v24 }
 0x2f6   : > { %1322 = vrcp.f32 %v701_v30 }
 0x2fb   : > { %v1321_v25 = vpop.eup %1320 }
 0x2fc   : > { %v629_v26 = vmul.f32 %v1321_v25, %v624_v20  ;;  %v1323_v32 = vpop.eup %1322  ;;  %v1220_v20 = vld [vmem:[%s1588_s8 + $0x8] sm:$0xff]  ;;  %v1223_v25 = vld [vmem:[%s1594_s16 + $0x10] sm:$0xff] }
 0x2fd   : > { %943 = vmatpush.bf16.msrb.mxu1 %v1223_v25 }
 0x2fe   : > { %v630_v27 = vpack.c.bf16 %v629_v26, %v629_v26 }
 0x300   : > { %1174 = vmatmul.msk.bf16.vlgmr.msrb.gmra.mxu0 %vm512_vm3, %v630_v27 }
 0x301   : > { %892 = vmatpush.bf16.msrb.mxu0 %v1220_v20 }
 0x305   : > { %893 = vmatpush.bf16.msrb.mxu0 %v1219_v21 }
 0x33e   : > { %v666_v31 = vpop.f32.mrf.mxu1 }
 0x343   : > { %v720_v33 = vpop.f32.mrf.mxu2 }
 0x344   : > { %v725_v34 = vmul.f32 %v1323_v32, %v720_v33  ;;  %v858_v33 = vperm.slane %v1610_v2, 5 }
 0x346   : > { %v726_v35 = vpack.c.bf16 %v725_v34, %v725_v34  ;;  %v668_v36 = vpop.f32.mrf.mxu1 }
 0x348   : > { %1178 = vmatmul.msk.bf16.vlgmr.msra.gmra.mxu0 %vm512_vm3, %v726_v35  ;;  %v860_v35 = vperm.slane %v1610_v2, 6 }
 0x34b   : > { %v722_v37 = vpop.f32.mrf.mxu2 }
 0x34e   : > { %v767_v38 = vpop.f32.mrf.mxu1 }
 0x34f   : > { %v768_v39 = vadd.f32 %v1645_v41, %v767_v38 }
 0x351   : > { %v771_v40 = vsel %vm512_vm3, %v768_v39, -inf }
 0x352   : > { %772 = vmax.xlane.f32.xlu1 %v771_v40  ;;  %v1222_v40 = vld [vmem:[%s1594_s16 + $0x8] sm:$0xff] }
 0x353   : > { %944 = vmatpush.bf16.msrb.mxu1 %v1222_v40 }
 0x356   : > { %v769_v42 = vpop.f32.mrf.mxu1 }
 0x357   : > { %v1221_v42 = vld [vmem:[%s1594_s16] sm:$0xff] }
 0x358   : > { %945 = vmatpush.bf16.msrb.mxu1 %v1221_v42 }
 0x36b   : > { %781 = vrot.lane.b32.xlu1 %v1621_v19, %s1441_s29 }
 0x37d   : > { %v647_v43 = vpop.f32.mrf.mxu0 }
 0x37e   : > { %v667_v44 = vadd.f32 %v666_v31, %v647_v43  ;;  %v1310_v43 = vld [vmem:[%s440_s18] ss:$0 sm:$0xff] }
 0x385   : > { %v649_v45 = vpop.f32.mrf.mxu0 }
 0x3c5   : > { %v773_v46 = vpop.xlane.xlu1 %772  ;;  %v743_v47 = vpop.f32.mrf.mxu0 }
 0x3c6   : > { %v774_v48 = vsub.f32 %v768_v39, %v773_v46  ;;  %v747_v49 = vadd.f32 %v743_v47, %v667_v44 }
 0x3c8   : > { %v775_v50 = vmul.f32 1.442695, %v774_v48 }
 0x3ca   : > { %1324 = vpow2.f32 %v775_v50 }
 0x3cd   : > { %v745_v51 = vpop.f32.mrf.mxu0 }
 0x3d0   : > { %v1325_v52 = vpop.eup %1324 }
 0x3d1   : > { %v777_v41 = vsel %vm512_vm3, %v1325_v52, 0.0  ;;  %v780_v19 = vpack.c.bf16 %v1325_v52, %v1325_v52 }
 0x3d2   : > { %778 = vadd.xlane.f32.xlu1 %v777_v41 }
 0x3dd   : > { %v782_v53 = vpop.permute.xlu1 %781 }
 0x3de   : > { %v787_v54 = vsel %vm550_vm2, %v782_v53, 0 }
 0x3df   : > { %796 = vmatpush.bf16.msra.mxu3 %v787_v54 }
 0x3e2   : > { %1180 = vmatmul.msk.bf16.vlgmr.msra.gmra.mxu3 %vm512_vm3, %v780_v19 }
 0x445   : > { %v779_v57 = vpop.xlane.xlu1 %778 }
 0x446   : > { %1326 = vrcp.f32 %v779_v57 }
 0x447   : > { %1328 = vrcp.f32 %v1442_v8  ;;  %v1311_v8 = vld [vmem:[%s1599_s10 + $0x8] ss:$0 sm:$0xff]  ;;  %s1354_s10 = scalar_lea.hbm %s1787_s15, 16 }
 0x448   : > { %p1356_p6 = scmp.lt.s32.totalorder %s1354_s10, %s1350_s13 }
 0x44a   : > { %p1357_p7 = por %p1356_p6, %p1355_p5 }
 0x44c   : > { %v1327_v58 = vpop.eup %1326  ;;  %p1358_p8 = pnand %p1357_p7, %p1353_p4 }
 0x44d   : > { %v1329_v9 = vpop.eup %1328 }
 0x44e   : > { %v833_v10 = vmul.f32 32.0, %v1329_v9  ;;  %vm837_vm4 = vweird.f32 %v1329_v9 }
 0x450   : > { %v834_v11 = vsub.f32 1.0, %v833_v10 }
 0x452   : > { %v835_v12 = vmul.f32 %v1329_v9, %v834_v11 }
 0x454   : > { %v836_v13 = vadd.f32 %v1329_v9, %v835_v12 }
 0x456   : > { %v838_v14 = vsel %vm837_vm4, %v1329_v9, %v836_v13 }
 0x465   : > { %v798_v59 = vpop.f32.mrf.mxu3 }
 0x466   : > { %v803_v60 = vmul.f32 %v1327_v58, %v798_v59 }
 0x468   : > { %v804_v61 = vpack.c.bf16 %v803_v60, %v803_v60 }
 0x46a   : > { %1181 = vmatmul.msk.bf16.vlgmr.msrb.gmra.mxu2 %vm512_vm3, %v804_v61 }
 0x46d   : > { %v800_v62 = vpop.f32.mrf.mxu3 }
 0x4ed   : > { %v821_v63 = vpop.f32.mrf.mxu2 }
 0x4ee   : > { %v825_v0 = vadd.f32 %v821_v63, %v747_v49  ;;  %v909_v49 = vperm.slane %v1610_v2, 4 }
 0x4f0   : > { %v826_v3 = vadd.f32 %v825_v0, %v1613_v4 }
 0x4f2   : > { %v828_v5 = vadd.f32 %v827_v1, %v826_v3 }
 0x4f4   : > { %v829_v6 = vsel %vm470_vm1, %v828_v5, 0.0 }
 0x4f5   : > { %v823_v7 = vpop.f32.mrf.mxu2  ;;  %830 = vadd.xlane.f32.xlu0 %v829_v6 }
 0x568   : > { %v831_v15 = vpop.xlane.xlu0 %830 }
 0x569   : > { %v839_v4 = vmul.f32 %v838_v14, %v831_v15 }
 0x56b   : > { %v840_v16 = vsub.f32 %v828_v5, %v839_v4  ;;  %v974_v5 = vperm.slane %v1610_v2, 7 }
 0x56d   : > { %v841_v17 = vmul.f32 %v840_v16, %v840_v16 }
 0x56f   : > { %v842_v18 = vsel %vm470_vm1, %v841_v17, 0.0 }
 0x570   : > { %843 = vadd.xlane.f32.xlu0 %v842_v18 }
 0x5e3   : > { %v844_v23 = vpop.xlane.xlu0 %843 }
 0x5e4   : > { %v845_v24 = vmul.f32 %v844_v23, %v838_v14 }
 0x5e6   : > { %v846_v26 = vadd.f32 1e-05, %v845_v24 }
 0x5e8   : > { %1330 = vrsqrt.f32 %v846_v26  ;;  %vm853_vm6 = vweird.f32 %v846_v26 }
 0x5ee   : > { %v1331_v27 = vpop.eup %1330 }
 0x5ef   : > { %v848_v28 = vmul.f32 %v1331_v27, %v846_v26  ;;  %vm854_vm5 = vweird.f32 %v1331_v27 }
 0x5f0   : > { %vm855_vm7 = vmor %vm853_vm6, %vm854_vm5 }
 0x5f1   : > { %v849_v29 = vmul.f32 %v1331_v27, %v848_v28 }
 0x5f3   : > { %v850_v30 = vmul.f32 0.5, %v849_v29 }
 0x5f5   : > { %v851_v31 = vsub.f32 1.5, %v850_v30 }
 0x5f7   : > { %v852_v32 = vmul.f32 %v1331_v27, %v851_v31 }
 0x5f9   : > { %v856_v34 = vsel %vm855_vm7, %v1331_v27, %v852_v32 }
 0x5fa   : > { %v857_v36 = vmul.f32 %v856_v34, %v840_v16 }
 0x5fc   : > { %v859_v37 = vmul.f32 %v858_v33, %v857_v36 }
 0x5fe   : > { %v861_v38 = vadd.f32 %v860_v35, %v859_v37 }
 0x600   : > { %v862_v39 = vpack.c.bf16 %v861_v38, %v861_v38 }
 0x602   : > { %1190 = vmatmul.msk.bf16.vlgmr.msrb.gmra.mxu0 %vm470_vm1, %v862_v39 }
 0x67f   : > { %v895_v44 = vpop.f32.mrf.mxu0 }
 0x680   : > { %v896_v45 = vadd.f32 %v1310_v43, %v895_v44 }
 0x682   : > { %v899_v46 = vmax.f32 %v896_v45, 0.0 }
 0x684   : > { %v900_v47 = vpack.c.bf16 %v899_v46, %v899_v46 }
 0x686   : > { %1207 = vmatmul.msk.bf16.vlgmr.msrb.gmra.mxu1 %vm934_vm8, %v900_v47 }
 0x687   : > { %v897_v48 = vpop.f32.mrf.mxu0 }
 0x703   : > { %v947_v50 = vpop.f32.mrf.mxu1 }
 0x704   : > { %v948_v51 = vadd.f32 %v947_v50, %v909_v49 }
 0x706   : > { %v951_v52 = vadd.f32 %v948_v51, %v861_v38 }
 0x708   : > { %v952_v41 = vsel %vm470_vm1, %v951_v52, 0.0 }
 0x709   : > { %953 = vadd.xlane.f32.xlu2 %v952_v41 }
 0x70b   : > { %v949_v53 = vpop.f32.mrf.mxu1 }
 0x77c   : > { %v954_v54 = vpop.xlane.xlu2 %953 }
 0x77d   : > { %v955_v19 = vmul.f32 %v954_v54, %v838_v14 }
 0x77f   : > { %v956_v55 = vsub.f32 %v951_v52, %v955_v19 }
 0x781   : > { %v957_v56 = vmul.f32 %v956_v55, %v956_v55 }
 0x783   : > { %v958_v57 = vsel %vm470_vm1, %v957_v56, 0.0 }
 0x784   : > { %959 = vadd.xlane.f32.xlu0 %v958_v57 }
 0x7f7   : > { %v960_v58 = vpop.xlane.xlu0 %959 }
 0x7f8   : > { %v961_v59 = vmul.f32 %v960_v58, %v838_v14 }
 0x7fa   : > { %v962_v60 = vadd.f32 1e-05, %v961_v59 }
 0x7fc   : > { %1332 = vrsqrt.f32 %v962_v60  ;;  %vm969_vm10 = vweird.f32 %v962_v60 }
 0x802   : > { %v1333_v61 = vpop.eup %1332 }
 0x803   : > { %v964_v62 = vmul.f32 %v1333_v61, %v962_v60  ;;  %vm970_vm9 = vweird.f32 %v1333_v61 }
 0x804   : > { %vm971_vm11 = vmor %vm969_vm10, %vm970_vm9 }
 0x805   : > { %v965_v63 = vmul.f32 %v1333_v61, %v964_v62 }
 0x807   : > { %v966_v0 = vmul.f32 0.5, %v965_v63 }
 0x809   : > { %v967_v1 = vsub.f32 1.5, %v966_v0 }
 0x80b   : > { %v968_v3 = vmul.f32 %v1333_v61, %v967_v1 }
 0x80d   : > { %v972_v6 = vsel %vm971_vm11, %v1333_v61, %v968_v3 }
 0x80e   : > { %v973_v7 = vmul.f32 %v972_v6, %v956_v55 }
 0x810   : > { %v975_v9 = vmul.f32 %v974_v5, %v973_v7 }
 0x812   : > { %v977_v10 = vadd.f32 %v1311_v8, %v975_v9 }
 0x814   : > { %978 = vst.msk [vmem:[%s1605_s0] sm:$0xff] %vm470_vm1, %v977_v10 }
 0x815   : > { %1361 = shalt.err (!%p1358_p8)
}
 0x816   : > { %1225 = dma.vmem_to_hbm [thread:$0]  (%p1537_p3), %s993_s21, 128, %s995_s22, %s980_s23  }
 0x817 PF: > { %s1790_s0 = sld [smem:[#allocation9_spill]] }
 0x818   : > { %s1791_s11 = sld [smem:[#allocation5_spill]] }
 0x81d   : > { %p1231_p10 = scmp.ge.s32.totalorder %s1790_s0, 2 }
 0x81e   : > { %s1006_s8 = sand.u32 1, %s1791_s11  }
 0x81f   : > { %p1228_p11 = pnand %p1231_p10, %p1547_p9  ;;  %s1007_s27 = scalar_lea.sflag [#allocation3], %s1006_s8 }
 0x821   : > { %p1229_p12 = pneg %p1228_p11 }
 0x823   : > { %1395 = dma.done.wait (%p1229_p12), %s1007_s27, 128  }
 0x824   : > { %1397 = vsyncadd (%p1229_p12), %s1007_s27, 4294967168  ;;  %s21_s12 = sadd.s32 1, %s1790_s0   ;;  %s1793_s25 = sld [smem:[#allocation6_spill]] }
 0x825   : > { %p18_p13 = scmp.ge.s32.totalorder %s21_s12, 6   ;;  %s1794_s29 = sld [smem:[#allocation14_spill]] }
 0x826   : > { %s1795_s30 = sld [smem:[#allocation7_spill]]  ;;  %s1799_s27 = smov %s1404_s28 }
 0x827   : > { %s1796_s9 = sld [smem:[#allocation8_spill]]  ;;  %20 = sbr.rel (!%p18_p13) target bundleno = 8 (0x8), region = 112 }
 0x828   : > { %s1797_s10 = sld [smem:[#allocation10_spill]] }
 0x829   : > { %s1798_s11 = sld [smem:[#allocation12_spill]] }
 0x82a   : > { %s1800_s28 = smov %s1793_s25 }
 0x82c   :  { %1013 = vsyncpa [#allocation3], 1 }
 0x82d   :  { %1015 = vsyncpa [#allocation3 + $0x1], 1 }

</bundles_post_ra>
